<compile_context>
chip_gen: v7x
topology: tpu7x:2x2x1
jax: 0.10.0
libtpu: 0.0.40
codegen_flags: <defaults>
</compile_context>

<pallas_src>
import functools

import jax
import jax.numpy as jnp
from jax.experimental import pallas as pl
from jax.experimental.pallas import tpu as pltpu


# Lane widths tried (widest first) for a copy-free reshape of the flat tensor.
LANE_CANDIDATES = (4096, 2048, 1024, 512, 256, 128)
# ~2 MiB f32 per block -> per-step overhead is negligible, DMAs are large.
TARGET_BLOCK_ELEMS = 512 * 1024


def _act_quant_kernel(x_ref, o_ref, *, a_bit: int):
    # Upcast to f32 so quantization levels match the f32 reference even for
    # bf16/fp16 inputs (HBM traffic stays in the narrow dtype).
    x = x_ref[...].astype(jnp.float32)
    xc = jnp.clip(x, 0.0, 1.0)
    if a_bit == 1:
        q = jnp.sign(xc)
    else:
        n = float(2 ** a_bit - 1)
        q = jnp.round(xc * n) * (1.0 / n)
    o_ref[...] = q.astype(o_ref.dtype)


def activation_quantize(x: jax.Array, a_bit: int) -> jax.Array:
    """Elementwise DoReFa activation quantization via a Pallas TPU kernel."""
    assert a_bit <= 8 or a_bit == 32

    # a_bit == 32 is the identity: skip the kernel (saves a full HBM read+write).
    if a_bit == 32:
        return x

    orig_shape = x.shape
    orig_dtype = x.dtype
    total = x.size
    if total == 0:
        return x

    flat = x.reshape(-1)

    # Pick the widest lane-dense layout that divides the element count so the
    # reshape is copy-free and no pad/slice round trip is needed.
    width = None
    for cand in LANE_CANDIDATES:
        if total % cand == 0:
            width = cand
            break
    padded_total = total
    if width is None:
        # Fallback: pad only up to one lane-row (<= width-1 extra elements).
        width = 512
        padded_total = pl.cdiv(total, width) * width
        flat = jnp.pad(flat, (0, padded_total - total))

    rows = padded_total // width
    x2d = flat.reshape(rows, width)

    # Block rows: multiple of 8 by construction (TARGET_BLOCK_ELEMS / width),
    # or the full row extent when the tensor is smaller than one block.
    block_rows = TARGET_BLOCK_ELEMS // width
    if block_rows > rows:
        block_rows = rows
    grid = pl.cdiv(rows, block_rows)

    kernel = functools.partial(_act_quant_kernel, a_bit=a_bit)

    out2d = pl.pallas_call(
        kernel,
        out_shape=jax.ShapeDtypeStruct((rows, width), x2d.dtype),
        grid_spec=pltpu.PrefetchScalarGridSpec(
            num_scalar_prefetch=0,
            grid=(grid,),
            in_specs=[pl.BlockSpec((block_rows, width), lambda i: (i, 0))],
            out_specs=pl.BlockSpec((block_rows, width), lambda i: (i, 0)),
        ),
        compiler_params=pltpu.CompilerParams(
            dimension_semantics=("parallel",),
        ),
    )(x2d)

    out = out2d.reshape(-1)
    if padded_total != total:
        out = out[:total]
    return out.reshape(orig_shape).astype(orig_dtype)


if __name__ == "__main__":
    key = jax.random.PRNGKey(0)
    # NCHW activation tensor, as in the PyTorch module's typical usage.
    x = jax.random.normal(key, (2, 4, 16, 16), dtype=jnp.float32)

    a_bit = 4
    y = jax.block_until_ready(activation_quantize(x, a_bit))

    # reference check (pure JAX)
    n = float(2 ** a_bit - 1)
    y_ref = jnp.round(jnp.clip(x, 0.0, 1.0) * n) / n
    assert y.shape == x.shape and y.dtype == x.dtype
    assert jnp.allclose(y, y_ref, atol=1e-6), "mismatch vs reference (a_bit=4)"

    # a_bit == 1 path
    y1 = jax.block_until_ready(activation_quantize(x, 1))
    assert jnp.allclose(y1, jnp.sign(jnp.clip(x, 0.0, 1.0)), atol=1e-6)

    # a_bit == 32 path (identity, short-circuited)
    y32 = jax.block_until_ready(activation_quantize(x, 32))
    assert jnp.allclose(y32, x, atol=1e-6)

    # odd-sized tensor exercises the pad fallback path
    x_odd = jax.random.normal(jax.random.PRNGKey(1), (3, 5, 7), dtype=jnp.float32)
    y_odd = jax.block_until_ready(activation_quantize(x_odd, 4))
    y_odd_ref = jnp.round(jnp.clip(x_odd, 0.0, 1.0) * n) / n
    assert jnp.allclose(y_odd, y_odd_ref, atol=1e-6), "mismatch vs reference (odd shape)"

    print("KERNEL_OK")
</pallas_src>

<mosaic_0001>
module attributes {stable_mosaic.version = 11 : i64} {
  func.func @_act_quant_kernel(%arg0: i32, %arg1: memref<1x2048xf32, #tpu.memory_space<vmem>>, %arg2: memref<1x2048xf32, #tpu.memory_space<vmem>>) attributes {dimension_semantics = [#tpu.dimension_semantics<parallel>], iteration_bounds = array<i64: 1>, scalar_prefetch = 0 : i64, scratch_operands = 0 : i64, tpu.core_type = #tpu.core_type<tc>, window_params = [{transform_indices = @transform_0, window_bounds = array<i64: 1, 2048>}, {transform_indices = @transform_1, window_bounds = array<i64: 1, 2048>}]} {
    %c0 = arith.constant 0 : index
    %c0_0 = arith.constant 0 : index
    %0 = vector.load %arg1[%c0, %c0_0] : memref<1x2048xf32, #tpu.memory_space<vmem>>, vector<1x2048xf32>
    %cst = arith.constant 0.000000e+00 : f32
    %cst_1 = arith.constant 1.000000e+00 : f32
    %1 = vector.broadcast %cst : f32 to vector<1x2048xf32>
    %2 = arith.maximumf %1, %0 : vector<1x2048xf32>
    %3 = vector.broadcast %cst_1 : f32 to vector<1x2048xf32>
    %4 = arith.minimumf %3, %2 : vector<1x2048xf32>
    %cst_2 = arith.constant 1.500000e+01 : f32
    %5 = vector.broadcast %cst_2 : f32 to vector<1x2048xf32>
    %6 = arith.mulf %4, %5 : vector<1x2048xf32>
    %7 = math.roundeven %6 : vector<1x2048xf32>
    %cst_3 = arith.constant 0.0666666701 : f32
    %8 = vector.broadcast %cst_3 : f32 to vector<1x2048xf32>
    %9 = arith.mulf %7, %8 : vector<1x2048xf32>
    %c0_4 = arith.constant 0 : index
    %c0_5 = arith.constant 0 : index
    %10 = vector.load %arg2[%c0_4, %c0_5] : memref<1x2048xf32, #tpu.memory_space<vmem>>, vector<1x2048xf32>
    tpu.vector_store %arg2[%c0_4, %c0_5], %9 {strides = array<i32>} : memref<1x2048xf32, #tpu.memory_space<vmem>>, vector<1x2048xf32>,
    return
  }
  func.func @transform_0(%arg0: i32) -> (i32, i32) {
    %c0_i32 = arith.constant 0 : i32
    %c0_i32_0 = arith.constant 0 : i32
    return %arg0, %c0_i32 : i32, i32
  }
  func.func @transform_1(%arg0: i32) -> (i32, i32) {
    %c0_i32 = arith.constant 0 : i32
    %c0_i32_0 = arith.constant 0 : i32
    return %arg0, %c0_i32 : i32, i32
  }
}

</mosaic_0001>

<bundles_post_ra>
// kernel: tpu_custom_call.1
= control target key start
LH: loop header
LB: loop body
LE: loop exit
PB: predicated region body
PF: predicated region fallthrough
CT: control target
= control target key end

     0   :  { %6 = vsyncpa [#allocation3], 0  ;;  %s138_s0 = inlined_call_operand.hbm [shape: f32[1,2048], index: 0, kind: input, shape index: {}]   ;;  %s139_s1 = inlined_call_operand.hbm [shape: f32[1,2048], index: 1, kind: output, shape index: {}]  }
   0x1   :  { %7 = vsyncpa [#allocation4], 0  ;;  %s102_s6 = smov [#allocation2]   ;;  %s54_s10 = scalar_lea.hbm %s138_s0, 256 }
   0x2   :  { %s14_s7 = sshll.u32 %s102_s6, 4  ;;  %p55_p0 = scmp.ne.s32.totalorder %s138_s0, %s54_s10  ;;  %s15_s7 = int_to_ptr.vmem [resolvable:$true] %s14_s7 }
   0x3   :  { %p58_p1 = scmp.lt.u32.totalorder %s54_s10, %s138_s0 }
   0x5   :  { %p60_p2 = pnand %p58_p1, %p55_p0 }
   0x7   :  { %63 = shalt.err (!%p60_p2)
}
   0x8   :  { %s64_s15 = scalar_lea.vmem %s15_s7, 256  ;;  %p69_p4 = scmp.lt.s32.totalorder %s15_s7, %s15_s7 }
   0x9   :  { %p65_p3 = scmp.ne.s32.totalorder %s15_s7, %s64_s15  ;;  %p70_p5 = scmp.lt.s32.totalorder %s64_s15, %s64_s15 }
   0xb   :  { %p71_p6 = por %p70_p5, %p69_p4 }
   0xd   :  { %p72_p7 = pnand %p71_p6, %p65_p3 }
   0xf   :  { %75 = shalt.err (!%p72_p7)
}
  0x10   :  { %17 = dma.hbm_to_vmem [thread:$0]  %s138_s0, 256, %s15_s7, [#allocation3]  }
  0x11   :  { %98 = dma.done.wait [#allocation3], 256  }
  0x12   :  { %99 = vsyncadd [#allocation3], 4294967040  ;;  %v21_v0 = vld [vmem:[#allocation2] sm:$0xff]  ;;  %v22_v1 = vld [vmem:[#allocation2 + $0x8] sm:$0xff]  ;;  %s103_s18 = smov [#allocation5]  }
  0x13   :  { %v23_v2 = vmax.f32 %v21_v0, 0.0  ;;  %v24_v3 = vmax.f32 %v22_v1, 0.0  ;;  %s41_s19 = sshll.u32 %s103_s18, 4  ;;  %s42_s19 = int_to_ptr.vmem [resolvable:$true] %s41_s19 }
  0x14   :  { %s76_s0 = scalar_lea.vmem %s42_s19, 256  ;;  %p81_p9 = scmp.lt.s32.totalorder %s42_s19, %s42_s19 }
  0x15   :  { %v25_v4 = vmin.f32 %v23_v2, 1.0  ;;  %v26_v5 = vmin.f32 %v24_v3, 1.0  ;;  %p77_p8 = scmp.ne.s32.totalorder %s42_s19, %s76_s0  ;;  %p82_p10 = scmp.lt.s32.totalorder %s76_s0, %s76_s0 }
  0x17   :  { %v27_v6 = vmul.f32 15.0, %v25_v4  ;;  %v28_v7 = vmul.f32 15.0, %v26_v5  ;;  %p83_p11 = por %p82_p10, %p81_p9 }
  0x19   :  { %v50_v8 = vround.rtne.f32 %v27_v6  ;;  %v51_v9 = vround.rtne.f32 %v28_v7  ;;  %p84_p12 = pnand %p83_p11, %p77_p8 }
  0x1b   :  { %v31_v10 = vmul.f32 0.06666667, %v50_v8  ;;  %v32_v11 = vmul.f32 0.06666667, %v51_v9 }
  0x1d   :  { %33 = vst [vmem:[#allocation5] sm:$0xff] %v31_v10  ;;  %34 = vst [vmem:[#allocation5 + $0x8] sm:$0xff] %v32_v11 }
  0x1e   :  { %87 = shalt.err (!%p84_p12)
}
  0x1f   :  { %s88_s22 = scalar_lea.hbm %s139_s1, 256 }
  0x20   :  { %p89_p13 = scmp.ne.s32.totalorder %s139_s1, %s88_s22  ;;  %p92_p0 = scmp.lt.u32.totalorder %s88_s22, %s139_s1 }
  0x22   :  { %p94_p1 = pnand %p92_p0, %p89_p13 }
  0x24   :  { %97 = shalt.err (!%p94_p1)
}
  0x25   :  { %44 = dma.vmem_to_hbm [thread:$0]  %s42_s19, 256, %s139_s1, [#allocation4]  }
  0x26   :  { %100 = dma.done.wait [#allocation4], 256  }
  0x27   :  { %101 = vsyncadd [#allocation4], 4294967040 }
  0x28   :  { %48 = vsyncpa [#allocation3], 1 }
  0x29   :  { %49 = vsyncpa [#allocation4], 1 }

</bundles_post_ra>
